<compile_context>
chip_gen: v7x
topology: tpu7x:2x2x1
jax: 0.10.0
libtpu: 0.0.40
codegen_flags: <defaults>
</compile_context>

<pallas_src>
import functools
import math

import jax
import jax.numpy as jnp
from jax.experimental import pallas as pl
from jax.experimental.pallas import tpu as pltpu


def _round_up(x, m):
    return ((x + m - 1) // m) * m


def _combine_loss_kernel(label_ref, cosine_ref, out_ref, *, s, m3, cos_m2,
                         sin_m2, tc):
    cos = cosine_ref[...]                                # (tn, tc) f32
    lab = label_ref[...]                                 # (tn, 1)  i32

    # One-hot margin mask against GLOBAL class indices (class axis is tiled).
    col = jax.lax.broadcasted_iota(jnp.int32, cos.shape, dimension=1)
    col = col + pl.program_id(1) * tc
    hit = (lab == col) & (lab != -1)                     # (tn,1) bcast (tn,tc)

    # cos(acos(x) + m2) = x*cos(m2) - sqrt(1 - x^2)*sin(m2); clamp radicand so
    # slight drift of |x| past 1.0 (upstream matmul rounding) doesn't NaN.
    sin_theta = jnp.sqrt(jnp.maximum(jnp.float32(1.0) - cos * cos,
                                     jnp.float32(0.0)))
    margin_val = (cos * jnp.float32(cos_m2)
                  - sin_theta * jnp.float32(sin_m2)
                  - jnp.float32(m3))

    out = jnp.where(hit, margin_val, cos)                # cos(acos(x)) = x
    out_ref[...] = (out * jnp.float32(s)).astype(out_ref.dtype)


def combine_loss(cosine, label, *, s=64.0, m2=0.3, m3=0.2, tn=None, tc=None):
    """cosine: (N, C) float32, label: (N,) int, -1 meaning 'no margin'."""
    N, C = cosine.shape

    # Tile sizes: large lane-dense blocks, clipped to the (padded) array dims.
    if tn is None:
        tn = min(256, _round_up(N, 8))
    if tc is None:
        tc = min(2048, _round_up(C, 128))
    Np = _round_up(N, tn)
    Cp = _round_up(C, tc)

    cos_p = cosine
    if (Np, Cp) != (N, C):
        cos_p = jnp.pad(cosine, ((0, Np - N), (0, Cp - C)))
    lab_p = label.astype(jnp.int32)
    if Np != N:
        lab_p = jnp.pad(lab_p, (0, Np - N), constant_values=-1)
    lab2d = lab_p.reshape(Np, 1)

    kernel = functools.partial(
        _combine_loss_kernel, s=s, m3=m3,
        cos_m2=math.cos(m2), sin_m2=math.sin(m2), tc=tc)

    out = pl.pallas_call(
        kernel,
        out_shape=jax.ShapeDtypeStruct((Np, Cp), cosine.dtype),
        grid=(Np // tn, Cp // tc),
        in_specs=[
            # Label block stays resident across all class tiles of a row block.
            pl.BlockSpec((tn, 1), lambda i, j: (i, 0)),
            pl.BlockSpec((tn, tc), lambda i, j: (i, j)),
        ],
        out_specs=pl.BlockSpec((tn, tc), lambda i, j: (i, j)),
        compiler_params=pltpu.CompilerParams(
            dimension_semantics=("parallel", "parallel")),
        cost_estimate=pl.CostEstimate(
            flops=6 * Np * Cp,
            transcendentals=Np * Cp,          # the sqrt
            bytes_accessed=2 * Np * Cp * 4 + 4 * Np),
    )(lab2d, cos_p)

    if (Np, Cp) != (N, C):
        out = out[:N, :C]
    return out


def _reference(cosine, label, *, s=64.0, m2=0.3, m3=0.2):
    """Pure-JAX reference matching the PyTorch forward."""
    N, C = cosine.shape
    valid = (label != -1)
    one_hot = (label[:, None] == jnp.arange(C)[None, :]) & valid[:, None]
    theta = jnp.arccos(cosine)
    theta = theta + jnp.where(one_hot, m2, 0.0)
    out = jnp.cos(theta)
    out = out - jnp.where(one_hot, m3, 0.0)
    return out * s


if __name__ == "__main__":
    key = jax.random.PRNGKey(0)
    k1, k2, k3, k4 = jax.random.split(key, 4)

    # Case 1: small lane-aligned shape (single block).
    N, C = 8, 128
    cosine = jax.random.uniform(
        k1, (N, C), dtype=jnp.float32, minval=-0.99, maxval=0.99)
    label = jax.random.randint(k2, (N,), 0, C, dtype=jnp.int32)
    label = label.at[1].set(-1).at[5].set(-1)

    out = jax.block_until_ready(combine_loss(cosine, label))
    ref = _reference(cosine, label)
    assert out.shape == (N, C) and out.dtype == jnp.float32
    assert jnp.allclose(out, ref, atol=1e-3, rtol=1e-3), (
        float(jnp.max(jnp.abs(out - ref))))

    # Case 2: multi-block 2-D grid (exercises the global column offset).
    N2, C2 = 16, 256
    cosine2 = jax.random.uniform(
        k3, (N2, C2), dtype=jnp.float32, minval=-0.99, maxval=0.99)
    label2 = jax.random.randint(k4, (N2,), 0, C2, dtype=jnp.int32)
    label2 = label2.at[0].set(-1).at[7].set(-1)

    out2 = jax.block_until_ready(
        combine_loss(cosine2, label2, tn=8, tc=128))
    ref2 = _reference(cosine2, label2)
    assert jnp.allclose(out2, ref2, atol=1e-3, rtol=1e-3), (
        float(jnp.max(jnp.abs(out2 - ref2))))

    print("KERNEL_OK")
</pallas_src>

<mosaic_0001>
module attributes {stable_mosaic.version = 11 : i64} {
  func.func @_combine_loss_kernel(%arg0: i32, %arg1: i32, %arg2: memref<8x1xi32, #tpu.memory_space<vmem>>, %arg3: memref<8x128xf32, #tpu.memory_space<vmem>>, %arg4: memref<8x128xf32, #tpu.memory_space<vmem>>) attributes {dimension_semantics = [#tpu.dimension_semantics<parallel>, #tpu.dimension_semantics<parallel>], iteration_bounds = array<i64: 1, 1>, scalar_prefetch = 0 : i64, scratch_operands = 0 : i64, tpu.core_type = #tpu.core_type<tc>, window_params = [{transform_indices = @transform_0, window_bounds = array<i64: 8, 1>}, {transform_indices = @transform_1, window_bounds = array<i64: 8, 128>}, {transform_indices = @transform_2, window_bounds = array<i64: 8, 128>}]} {
    %c0 = arith.constant 0 : index
    %c0_0 = arith.constant 0 : index
    %0 = vector.load %arg3[%c0, %c0_0] : memref<8x128xf32, #tpu.memory_space<vmem>>, vector<8x128xf32>
    %c0_1 = arith.constant 0 : index
    %c0_2 = arith.constant 0 : index
    %1 = vector.load %arg2[%c0_1, %c0_2] : memref<8x1xi32, #tpu.memory_space<vmem>>, vector<8x1xi32>
    %2 = tpu.iota {dimensions = array<i32: 1>} : vector<8x128xi32>
    %c128_i32 = arith.constant 128 : i32
    %3 = arith.muli %arg1, %c128_i32 : i32
    %4 = vector.broadcast %3 : i32 to vector<8x128xi32>
    %5 = arith.addi %2, %4 : vector<8x128xi32>
    %6 = vector.broadcast %1 : vector<8x1xi32> to vector<8x128xi32>
    %7 = arith.cmpi eq, %6, %5 : vector<8x128xi32>
    %c-1_i32 = arith.constant -1 : i32
    %8 = vector.broadcast %c-1_i32 : i32 to vector<8x1xi32>
    %9 = arith.cmpi ne, %1, %8 : vector<8x1xi32>
    %10 = vector.broadcast %9 : vector<8x1xi1> to vector<8x128xi1>
    %11 = arith.andi %7, %10 : vector<8x128xi1>
    %12 = arith.mulf %0, %0 : vector<8x128xf32>
    %cst = arith.constant 1.000000e+00 : f32
    %13 = vector.broadcast %cst : f32 to vector<8x128xf32>
    %14 = arith.subf %13, %12 : vector<8x128xf32>
    %cst_3 = arith.constant 0.000000e+00 : f32
    %15 = vector.broadcast %cst_3 : f32 to vector<8x128xf32>
    %16 = arith.maximumf %14, %15 : vector<8x128xf32>
    %17 = math.sqrt %16 : vector<8x128xf32>
    %cst_4 = arith.constant 0.955336511 : f32
    %18 = vector.broadcast %cst_4 : f32 to vector<8x128xf32>
    %19 = arith.mulf %0, %18 : vector<8x128xf32>
    %cst_5 = arith.constant 0.295520216 : f32
    %20 = vector.broadcast %cst_5 : f32 to vector<8x128xf32>
    %21 = arith.mulf %17, %20 : vector<8x128xf32>
    %22 = arith.subf %19, %21 : vector<8x128xf32>
    %cst_6 = arith.constant 2.000000e-01 : f32
    %23 = vector.broadcast %cst_6 : f32 to vector<8x128xf32>
    %24 = arith.subf %22, %23 : vector<8x128xf32>
    %25 = arith.select %11, %24, %0 : vector<8x128xi1>, vector<8x128xf32>
    %cst_7 = arith.constant 6.400000e+01 : f32
    %26 = vector.broadcast %cst_7 : f32 to vector<8x128xf32>
    %27 = arith.mulf %25, %26 : vector<8x128xf32>
    %c0_8 = arith.constant 0 : index
    %c0_9 = arith.constant 0 : index
    %28 = vector.load %arg4[%c0_8, %c0_9] : memref<8x128xf32, #tpu.memory_space<vmem>>, vector<8x128xf32>
    tpu.vector_store %arg4[%c0_8, %c0_9], %27 {strides = array<i32>} : memref<8x128xf32, #tpu.memory_space<vmem>>, vector<8x128xf32>,
    return
  }
  func.func @transform_0(%arg0: i32, %arg1: i32) -> (i32, i32) {
    %c0_i32 = arith.constant 0 : i32
    %c0_i32_0 = arith.constant 0 : i32
    return %arg0, %c0_i32 : i32, i32
  }
  func.func @transform_1(%arg0: i32, %arg1: i32) -> (i32, i32) {
    %c0_i32 = arith.constant 0 : i32
    return %arg0, %arg1 : i32, i32
  }
  func.func @transform_2(%arg0: i32, %arg1: i32) -> (i32, i32) {
    %c0_i32 = arith.constant 0 : i32
    return %arg0, %arg1 : i32, i32
  }
}

</mosaic_0001>

<bundles_post_ra>
// kernel: tpu_custom_call.1
= control target key start
LH: loop header
LB: loop body
LE: loop exit
PB: predicated region body
PF: predicated region fallthrough
CT: control target
= control target key end

     0   :  { %s126_s0 = inlined_call_operand.vmem [shape: s32[8,1], index: 0, kind: input, shape index: {}]   ;;  %s127_s1 = inlined_call_operand.vmem [shape: f32[8,128], index: 1, kind: input, shape index: {}]   ;;  %s128_s2 = inlined_call_operand.hbm [shape: f32[8,128], index: 2, kind: output, shape index: {}]  }
   0x1   :  { %v13_v0 = vld [vmem:[%s126_s0] sm:$0xff] }
   0x2   :  { %7 = vsyncpa [#allocation3], 0  ;;  %v91_v1 = vmov 0   ;;  %vm23_vm0 = vcmp.ne.s32.totalorder %v13_v0, 4294967295  ;;  %v12_v3 = vld [vmem:[%s127_s1] sm:$0xff]  ;;  %v14_v14 = vlaneseq  ;;  %s92_s0 = smov [#allocation2]  }
   0x3   :  { %64 = vset.pattern.permute.xlu0 %v91_v1  ;;  %v24_v2 = vsel %vm23_vm0, 1, %v91_v1  ;;  %v30_v4 = vmul.f32 %v12_v3, %v12_v3  ;;  %v40_v12 = vmul.f32 0.9553365, %v12_v3  ;;  %s53_s1 = sshll.u32 %s92_s0, 4  ;;  %s54_s1 = int_to_ptr.vmem [resolvable:$true] %s53_s1 }
   0x4   :  { %20 = vperm.xlu0 %64, %v13_v0   ;;  %v15_v17 = vand.u32 127, %v14_v14  ;;  %s67_s13 = scalar_lea.vmem %s54_s1, 128  ;;  %p72_p1 = scmp.lt.s32.totalorder %s54_s1, %s54_s1 }
   0x5   :  { %v31_v5 = vsub.f32 1.0, %v30_v4  ;;  %p68_p0 = scmp.ne.s32.totalorder %s54_s1, %s67_s13  ;;  %p73_p2 = scmp.lt.s32.totalorder %s67_s13, %s67_s13 }
   0x7   :  { %v32_v6 = vmax.f32 %v31_v5, 0.0  ;;  %p74_p3 = por %p73_p2, %p72_p1 }
   0x8   :  { %26 = vperm.xlu0 %64, %v24_v2  }
   0x9   :  { %65 = vrsqrt.f32 %v32_v6  ;;  %vm35_vm1 = vcmp.eq.f32.partialorder %v32_v6, inf  ;;  %v38_v9 = vand.u32 2147483648, %v32_v6  ;;  %vm37_vm2 = vcmp.eq.f32.partialorder %v32_v6, 0.0  ;;  %p75_p4 = pnand %p74_p3, %p68_p0 }
  0x13   :  { %v66_v7 = vpop.eup %65 }
  0x14   :  { %v34_v8 = vmul.f32 %v66_v7, %v32_v6 }
  0x16   :  { %v36_v10 = vsel %vm35_vm1, %v32_v6, %v34_v8 }
  0x17   :  { %v39_v11 = vsel %vm37_vm2, %v38_v9, %v36_v10 }
  0x18   :  { %v41_v13 = vmul.f32 0.29552022, %v39_v11 }
  0x1a   :  { %v42_v15 = vsub.f32 %v40_v12, %v41_v13 }
  0x1c   :  { %v61_v18 = vadd.f32 -0.2, %v42_v15 }
  0x83   :  { %v21_v16 = vpop.permute.xlu0 %20 }
  0x84   :  { %vm22_vm3 = vcmp.eq.s32.totalorder %v21_v16, %v15_v17 }
  0x87   :  { %v27_v19 = vpop.permute.xlu0 %26 }
  0x88   :  { %vm28_vm4 = vcmp.eq.s32.totalorder %v27_v19, 1 }
  0x89   :  { %vm29_vm5 = vmand %vm22_vm3, %vm28_vm4 }
  0x8a   :  { %v44_v20 = vsel %vm29_vm5, %v61_v18, %v12_v3 }
  0x8b   :  { %v45_v21 = vmul.f32 64.0, %v44_v20 }
  0x8d   :  { %46 = vst [vmem:[#allocation2] sm:$0xff] %v45_v21 }
  0x8e   :  { %78 = shalt.err (!%p75_p4)
}
  0x8f   :  { %s79_s16 = scalar_lea.hbm %s128_s2, 128 }
  0x90   :  { %p80_p5 = scmp.ne.s32.totalorder %s128_s2, %s79_s16  ;;  %p83_p6 = scmp.lt.u32.totalorder %s79_s16, %s128_s2 }
  0x92   :  { %p85_p7 = pnand %p83_p6, %p80_p5 }
  0x94   :  { %88 = shalt.err (!%p85_p7)
}
  0x95   :  { %56 = dma.vmem_to_hbm [thread:$0]  %s54_s1, 128, %s128_s2, [#allocation3]  }
  0x96   :  { %89 = dma.done.wait [#allocation3], 128  }
  0x97   :  { %90 = vsyncadd [#allocation3], 4294967168 }
  0x98   :  { %60 = vsyncpa [#allocation3], 1 }

</bundles_post_ra>
